<compile_context>
chip_gen: v7x
topology: tpu7x:2x2x1
jax: 0.10.0
libtpu: 0.0.40
codegen_flags: <defaults>
</compile_context>

<pallas_src>
import functools

import jax
import jax.numpy as jnp
from jax.experimental import pallas as pl
from jax.experimental.pallas import tpu as pltpu

LEAKY_SLOPE = 0.2
BN_EPS = 1e-5

_VMEM_LIMIT_BYTES = 32 * 1024 * 1024   # safe on v5e (raise), v6e, v7x (== default scoped)
_TILE_BUDGET_BYTES = 20 * 1024 * 1024  # budget for per-step f32 intermediates
_TILE_P_CAP = 8192                     # review: 8192 on v5e/v6e, <=8192 on v7x


def _leaky_relu(x):
    return jnp.where(x > 0, x, LEAKY_SLOPE * x)


# ----------------------------------------------------------------------------
# Pass A: per-block partial statistics of h1 (sum and Gram).  No conv2 here.
# ----------------------------------------------------------------------------
def _stats_kernel(x_ref, w1_ref, b1_ref, s1_ref, g_ref,
                  *, hw_valid, tile_p, needs_mask):
    # conv1 (f32 MXU, K = Cin is tiny) + bias -> LeakyReLU
    h1 = jnp.dot(w1_ref[...], x_ref[...],
                 preferred_element_type=jnp.float32) + b1_ref[...]
    h1 = _leaky_relu(h1)                                   # (C1, tile_p) f32

    if needs_mask:
        # Mask the narrow (C1-wide) h1 instead of h2/h2^2: zeroed columns contribute
        # exactly zero to both s1 and the Gram, so the BN statistics stay correct.
        j = pl.program_id(1)
        lane = jax.lax.broadcasted_iota(jnp.int32, (1, tile_p), 1)
        h1 = h1 * ((j * tile_p + lane) < hw_valid).astype(jnp.float32)

    # Partial first moment of h1 over this tile's pixels.
    s1_ref[...] = jnp.sum(h1, axis=1, keepdims=True)       # (C1, 1)

    # Partial Gram G = h1 @ h1^T (contraction over the pixel axis -- great MXU shape).
    # h1 is narrowed to bf16 here, matching the bf16 h1 the output pass feeds conv2.
    h1b = h1.astype(jnp.bfloat16)
    g_ref[...] = jax.lax.dot_general(
        h1b, h1b, dimension_numbers=(((1,), (1,)), ((), ())),
        preferred_element_type=jnp.float32)                 # (C1, C1)


# ----------------------------------------------------------------------------
# Pass B: conv1 -> conv2 (bf16 MXU) -> fused BN scale/shift -> leaky -> final conv.
# ----------------------------------------------------------------------------
def _output_kernel(x_ref, w1_ref, b1_ref, w2_ref, scale_ref, shift_ref, w3_ref,
                   out_ref):
    h1 = jnp.dot(w1_ref[...], x_ref[...],
                 preferred_element_type=jnp.float32) + b1_ref[...]
    h1 = _leaky_relu(h1).astype(jnp.bfloat16)               # (C1, tile_p) bf16
    # Dominant matmul: bf16 x bf16 -> f32 accumulate on the MXU.
    h2 = jnp.dot(w2_ref[...], h1, preferred_element_type=jnp.float32)  # (C2, tile_p)
    # BatchNorm folded into per-channel scale/shift (2 VPU ops per element).
    hn = _leaky_relu(h2 * scale_ref[...] + shift_ref[...])
    # Final 1x1 conv to a single channel: VPU multiply + sublane reduce -> lane-dense.
    out_ref[...] = jnp.sum(hn * w3_ref[...], axis=0, keepdims=True).astype(out_ref.dtype)


def pixel_discriminator(x_nchw, params, *, tile_p=None):
    """Forward pass of PixelDiscriminator.  x_nchw: (N, C, H, W) float32."""
    w1, b1, w2, gamma, beta, w3 = params
    N, Cin, H, W = x_nchw.shape
    C1 = w1.shape[0]
    C2 = w2.shape[0]
    HW = H * W

    # ---- lane tiling: biggest tile that fits the VMEM intermediate budget ------
    hw_ceil = pl.cdiv(HW, 128) * 128
    if tile_p is None:
        # Rough f32-intermediate bytes per pixel of tile in the output pass
        # (double-buffered x/out blocks + h1 f32/bf16 + h2/hn/product temps).
        bytes_per_px = 8 * Cin + 6 * C1 + 16 * C2 + 16
        tile_p = _TILE_BUDGET_BYTES // bytes_per_px
    tile_p = max(128, min(int(tile_p), _TILE_P_CAP, hw_ceil))
    tile_p = (tile_p // 128) * 128
    HW_pad = pl.cdiv(HW, tile_p) * tile_p
    nt = HW_pad // tile_p
    needs_mask = HW_pad != HW

    # NCHW stays channel-major: free reshape to (N, Cin, HW); zero-pad lanes if needed.
    x_flat = x_nchw.reshape(N, Cin, HW).astype(jnp.float32)
    if needs_mask:
        x_flat = jnp.pad(x_flat, ((0, 0), (0, 0), (0, HW_pad - HW)))

    cparams = pltpu.CompilerParams(
        dimension_semantics=("parallel", "parallel"),
        vmem_limit_bytes=_VMEM_LIMIT_BYTES)

    # ---- pass A: per-block partial (s1, Gram) statistics ------------------------
    s1_part, g_part = pl.pallas_call(
        functools.partial(_stats_kernel, hw_valid=HW, tile_p=tile_p,
                          needs_mask=needs_mask),
        out_shape=(jax.ShapeDtypeStruct((N, nt, C1, 1), jnp.float32),
                   jax.ShapeDtypeStruct((N, nt, C1, C1), jnp.float32)),
        grid_spec=pltpu.PrefetchScalarGridSpec(
            num_scalar_prefetch=0,
            grid=(N, nt),
            in_specs=[
                pl.BlockSpec((None, Cin, tile_p), lambda n, j: (n, 0, j)),  # x tile
                pl.BlockSpec((C1, Cin), lambda n, j: (0, 0)),               # W1
                pl.BlockSpec((C1, 1), lambda n, j: (0, 0)),                 # b1
            ],
            out_specs=[
                pl.BlockSpec((None, None, C1, 1), lambda n, j: (n, j, 0, 0)),
                pl.BlockSpec((None, None, C1, C1), lambda n, j: (n, j, 0, 0)),
            ],
        ),
        compiler_params=cparams,
    )(x_flat, w1, b1)

    # ---- tree-reduce partials (XLA), recover BN sums algebraically, fold BN ----
    n_total = float(N * HW)                    # valid pixels only (masked pads excluded)
    s1 = jnp.sum(s1_part, axis=(0, 1))         # (C1, 1)
    g = jnp.sum(g_part, axis=(0, 1))           # (C1, C1)
    ch_sum = w2 @ s1                                              # sum_p h2     (C2, 1)
    ch_sqsum = jnp.sum((w2 @ g) * w2, axis=1, keepdims=True)      # sum_p h2^2   (C2, 1)
    mean = ch_sum / n_total
    var = jnp.maximum(ch_sqsum / n_total - mean * mean, 0.0)      # biased (training BN)
    scale = gamma * jax.lax.rsqrt(var + BN_EPS)                   # (C2, 1)
    shift = beta - mean * scale                                   # (C2, 1)

    # ---- pass B: normalize + output (lane-dense, already NCHW order) ------------
    out = pl.pallas_call(
        _output_kernel,
        out_shape=jax.ShapeDtypeStruct((N, 1, HW_pad), jnp.float32),
        grid_spec=pltpu.PrefetchScalarGridSpec(
            num_scalar_prefetch=0,
            grid=(N, nt),
            in_specs=[
                pl.BlockSpec((None, Cin, tile_p), lambda n, j: (n, 0, j)),  # x tile
                pl.BlockSpec((C1, Cin), lambda n, j: (0, 0)),               # W1
                pl.BlockSpec((C1, 1), lambda n, j: (0, 0)),                 # b1
                pl.BlockSpec((C2, C1), lambda n, j: (0, 0)),                # W2 (bf16)
                pl.BlockSpec((C2, 1), lambda n, j: (0, 0)),                 # BN scale
                pl.BlockSpec((C2, 1), lambda n, j: (0, 0)),                 # BN shift
                pl.BlockSpec((C2, 1), lambda n, j: (0, 0)),                 # W3
            ],
            out_specs=pl.BlockSpec((None, 1, tile_p), lambda n, j: (n, 0, j)),
        ),
        compiler_params=cparams,
    )(x_flat, w1, b1, w2.astype(jnp.bfloat16), scale, shift, w3)

    # Padded lanes hold garbage (bias-driven) -> crop, then reshape to NCHW.
    return out[:, :, :HW].reshape(N, 1, H, W)


# ----------------------------------------------------------------------------
# Pure-JAX f32 reference (same math as the PyTorch forward, training-mode BN).
# ----------------------------------------------------------------------------
def _reference(x_nchw, params):
    w1, b1, w2, gamma, beta, w3 = params
    N, Cin, H, W = x_nchw.shape
    x = x_nchw.reshape(N, Cin, H * W).astype(jnp.float32)
    h = jnp.einsum('oc,ncp->nop', w1, x) + b1[None]
    h = _leaky_relu(h)
    h = jnp.einsum('oc,ncp->nop', w2, h)
    mean = jnp.mean(h, axis=(0, 2), keepdims=True)
    var = jnp.mean((h - mean) ** 2, axis=(0, 2), keepdims=True)   # biased (training BN)
    h = (h - mean) * jax.lax.rsqrt(var + BN_EPS) * gamma[None] + beta[None]
    h = _leaky_relu(h)
    y = jnp.einsum('oc,ncp->nop', w3.T, h)
    return y.reshape(N, 1, H, W)


def init_params(key, input_nc, ndf):
    """Deterministic synthetic init.

    Weight layouts match PyTorch Conv2d (out_ch, in_ch) for the 1x1 kernels;
    bias / BN params are stored as (C, 1) columns; w3 is stored transposed (2*ndf, 1).
    """
    k1, k2, k3, k4, k5, k6 = jax.random.split(key, 6)
    c1, c2 = ndf, 2 * ndf
    w1 = 0.2 * jax.random.normal(k1, (c1, input_nc), jnp.float32)      # conv1 weight
    b1 = 0.2 * jax.random.normal(k2, (c1, 1), jnp.float32)             # conv1 bias
    w2 = 0.2 * jax.random.normal(k3, (c2, c1), jnp.float32)            # conv2, no bias
    gamma = 1.0 + 0.1 * jax.random.normal(k4, (c2, 1), jnp.float32)    # BN weight
    beta = 0.1 * jax.random.normal(k5, (c2, 1), jnp.float32)           # BN bias
    w3 = 0.2 * jax.random.normal(k6, (c2, 1), jnp.float32)             # conv3^T, no bias
    return (w1, b1, w2, gamma, beta, w3)


def _check(x, params, tol):
    out = jax.block_until_ready(pixel_discriminator(x, params))
    N, _, H, W = x.shape
    assert out.shape == (N, 1, H, W), out.shape
    ref = jax.block_until_ready(_reference(x, params))
    err = float(jnp.max(jnp.abs(out - ref)))
    # Tolerance documents the deliberate bf16 path of the dominant conv2 matmul
    # (h1 and W2 narrowed for the MXU) and the Gram-form BN statistics; the
    # reference is pure f32, so errors are at the bf16-rounding level.
    assert jnp.allclose(out, ref, rtol=tol, atol=tol), err


if __name__ == "__main__":
    key = jax.random.PRNGKey(0)
    kx, kp, kx2, kp2 = jax.random.split(key, 4)

    # Case 1: batch=2, input_nc=4, spatial=16x16, ndf=16 (HW divisible by 128 tile).
    N, Cin, H, W = 2, 4, 16, 16
    ndf = 16
    x = jax.random.normal(kx, (N, Cin, H, W), jnp.float32)
    params = init_params(kp, Cin, ndf)
    _check(x, params, tol=2e-2)

    # Case 2: ragged spatial size (HW=100 -> padded to 128, masked BN statistics).
    N2, Cin2, H2, W2, ndf2 = 2, 3, 10, 10, 8
    x2 = jax.random.normal(kx2, (N2, Cin2, H2, W2), jnp.float32)
    params2 = init_params(kp2, Cin2, ndf2)
    _check(x2, params2, tol=2e-2)

    print("KERNEL_OK")
</pallas_src>

<mosaic_0001>
module attributes {stable_mosaic.version = 11 : i64} {
  func.func @_stats_kernel(%arg0: i32, %arg1: i32, %arg2: memref<1x4x256xf32, #tpu.memory_space<vmem>>, %arg3: memref<16x4xf32, #tpu.memory_space<vmem>>, %arg4: memref<16x1xf32, #tpu.memory_space<vmem>>, %arg5: memref<1x1x16x1xf32, #tpu.memory_space<vmem>>, %arg6: memref<1x1x16x16xf32, #tpu.memory_space<vmem>>) attributes {dimension_semantics = [#tpu.dimension_semantics<parallel>, #tpu.dimension_semantics<parallel>], iteration_bounds = array<i64: 2, 1>, scalar_prefetch = 0 : i64, scratch_operands = 0 : i64, tpu.core_type = #tpu.core_type<tc>, window_params = [{transform_indices = @transform_0, window_bounds = array<i64: 1, 4, 256>}, {pipeline_mode = #tpu.pipeline_mode<synchronous>, transform_indices = @transform_1, window_bounds = array<i64: 16, 4>}, {pipeline_mode = #tpu.pipeline_mode<synchronous>, transform_indices = @transform_2, window_bounds = array<i64: 16, 1>}, {transform_indices = @transform_3, window_bounds = array<i64: 1, 1, 16, 1>}, {transform_indices = @transform_4, window_bounds = array<i64: 1, 1, 16, 16>}]} {
    %c0 = arith.constant 0 : index
    %c0_0 = arith.constant 0 : index
    %0 = vector.load %arg3[%c0, %c0_0] : memref<16x4xf32, #tpu.memory_space<vmem>>, vector<16x4xf32>
    %c0_1 = arith.constant 0 : index
    %c0_2 = arith.constant 0 : index
    %c0_3 = arith.constant 0 : index
    %1 = vector.load %arg2[%c0_1, %c0_2, %c0_3] : memref<1x4x256xf32, #tpu.memory_space<vmem>>, vector<1x4x256xf32>
    %2 = vector.shape_cast %1 : vector<1x4x256xf32> to vector<4x256xf32>
    %cst = arith.constant dense<0.000000e+00> : vector<16x256xf32>
    %3 = tpu.matmul %0, %2, %cst {dimension_numbers = #tpu.dot_dimension_numbers<[1], [0], [0], [1], [0, 0, 1, 1], [], []>} : vector<16x4xf32>, vector<4x256xf32>, vector<16x256xf32> -> vector<16x256xf32>
    %c0_4 = arith.constant 0 : index
    %c0_5 = arith.constant 0 : index
    %4 = vector.load %arg4[%c0_4, %c0_5] : memref<16x1xf32, #tpu.memory_space<vmem>>, vector<16x1xf32>
    %5 = vector.broadcast %4 : vector<16x1xf32> to vector<16x256xf32>
    %6 = arith.addf %3, %5 : vector<16x256xf32>
    %cst_6 = arith.constant 0.000000e+00 : f32
    %7 = vector.broadcast %cst_6 : f32 to vector<16x256xf32>
    %8 = arith.cmpf ogt, %6, %7 : vector<16x256xf32>
    %cst_7 = arith.constant 2.000000e-01 : f32
    %9 = vector.broadcast %cst_7 : f32 to vector<16x256xf32>
    %10 = arith.mulf %9, %6 : vector<16x256xf32>
    %11 = arith.select %8, %6, %10 : vector<16x256xi1>, vector<16x256xf32>
    %cst_8 = arith.constant dense<0.000000e+00> : vector<16xf32>
    %12 = vector.multi_reduction <add>, %11, %cst_8 [1] : vector<16x256xf32> to vector<16xf32>
    %13 = vector.shape_cast %12 : vector<16xf32> to vector<16x1xf32>
    %c0_9 = arith.constant 0 : index
    %c0_10 = arith.constant 0 : index
    %c0_11 = arith.constant 0 : index
    %c0_12 = arith.constant 0 : index
    %14 = vector.load %arg5[%c0_9, %c0_10, %c0_11, %c0_12] : memref<1x1x16x1xf32, #tpu.memory_space<vmem>>, vector<1x1x16x1xf32>
    %15 = vector.shape_cast %14 : vector<1x1x16x1xf32> to vector<16x1xf32>
    %16 = vector.shape_cast %13 : vector<16x1xf32> to vector<1x1x16x1xf32>
    tpu.vector_store %arg5[%c0_9, %c0_10, %c0_11, %c0_12], %16 {strides = array<i32>} : memref<1x1x16x1xf32, #tpu.memory_space<vmem>>, vector<1x1x16x1xf32>,
    %17 = arith.truncf %11 : vector<16x256xf32> to vector<16x256xbf16>
    %cst_13 = arith.constant dense<0.000000e+00> : vector<16x16xf32>
    %18 = tpu.matmul %17, %17, %cst_13 {dimension_numbers = #tpu.dot_dimension_numbers<[1], [1], [0], [0], [0, 0, 1, 0], [], []>} : vector<16x256xbf16>, vector<16x256xbf16>, vector<16x16xf32> -> vector<16x16xf32>
    %c0_14 = arith.constant 0 : index
    %c0_15 = arith.constant 0 : index
    %c0_16 = arith.constant 0 : index
    %c0_17 = arith.constant 0 : index
    %19 = vector.load %arg6[%c0_14, %c0_15, %c0_16, %c0_17] : memref<1x1x16x16xf32, #tpu.memory_space<vmem>>, vector<1x1x16x16xf32>
    %20 = vector.shape_cast %19 : vector<1x1x16x16xf32> to vector<16x16xf32>
    %21 = vector.shape_cast %18 : vector<16x16xf32> to vector<1x1x16x16xf32>
    tpu.vector_store %arg6[%c0_14, %c0_15, %c0_16, %c0_17], %21 {strides = array<i32>} : memref<1x1x16x16xf32, #tpu.memory_space<vmem>>, vector<1x1x16x16xf32>,
    return
  }
  func.func @transform_0(%arg0: i32, %arg1: i32) -> (i32, i32, i32) {
    %c0_i32 = arith.constant 0 : i32
    %c0_i32_0 = arith.constant 0 : i32
    return %arg0, %c0_i32, %arg1 : i32, i32, i32
  }
  func.func @transform_1(%arg0: i32, %arg1: i32) -> (i32, i32) {
    %c0_i32 = arith.constant 0 : i32
    %c0_i32_0 = arith.constant 0 : i32
    %c0_i32_1 = arith.constant 0 : i32
    return %c0_i32, %c0_i32_0 : i32, i32
  }
  func.func @transform_2(%arg0: i32, %arg1: i32) -> (i32, i32) {
    %c0_i32 = arith.constant 0 : i32
    %c0_i32_0 = arith.constant 0 : i32
    %c0_i32_1 = arith.constant 0 : i32
    return %c0_i32, %c0_i32_0 : i32, i32
  }
  func.func @transform_3(%arg0: i32, %arg1: i32) -> (i32, i32, i32, i32) {
    %c0_i32 = arith.constant 0 : i32
    %c0_i32_0 = arith.constant 0 : i32
    %c0_i32_1 = arith.constant 0 : i32
    return %arg0, %arg1, %c0_i32, %c0_i32_0 : i32, i32, i32, i32
  }
  func.func @transform_4(%arg0: i32, %arg1: i32) -> (i32, i32, i32, i32) {
    %c0_i32 = arith.constant 0 : i32
    %c0_i32_0 = arith.constant 0 : i32
    %c0_i32_1 = arith.constant 0 : i32
    return %arg0, %arg1, %c0_i32, %c0_i32_0 : i32, i32, i32, i32
  }
}

</mosaic_0001>

<bundles_post_ra>
// kernel: tpu_custom_call.1
= control target key start
LH: loop header
LB: loop body
LE: loop exit
PB: predicated region body
PF: predicated region fallthrough
CT: control target
= control target key end

     0   :  { %10 = vsyncpa [#allocation3], 0  ;;  %s898_s0 = inlined_call_operand.vmem [shape: f32[2,4,256], index: 0, kind: input, shape index: {}]   ;;  %s899_s1 = inlined_call_operand.vmem [shape: f32[16,4], index: 1, kind: input, shape index: {}]   ;;  %s900_s2 = inlined_call_operand.vmem [shape: f32[16,1], index: 2, kind: input, shape index: {}]   ;;  %s901_s3 = inlined_call_operand.vmem [shape: f32[2,1,16,1], index: 3, kind: output, shape index: {0}]   ;;  %s902_s4 = inlined_call_operand.hbm [shape: f32[2,1,16,16], index: 4, kind: output, shape index: {1}]  }
   0x1   :  { %12 = vsyncpa [#allocation3 + $0x1], 0  ;;  %s764_s15 = smov 0   ;;  %s766_s16 = smov 0  }
   0x2   :  { %s768_s17 = smov 0   ;;  %s770_s18 = smov 0  }
   0x3   :  { %s772_s19 = smov 0   ;;  %s774_s20 = smov 0  }
   0x4 LB: > { %s571_s21 = sadd.s32 4294967295, %s732_s20   ;;  %s572_s22 = sadd.s32 4294967294, %s732_s20   ;;  %s732_s20 = sphi %s774_s20, %s18_s20   ;;  %s728_s19 = sphi %s772_s19, %s909_s19   ;;  %s724_s18 = sphi %s770_s18, %s908_s18   ;;  %s720_s17 = sphi %s768_s17, %s907_s17   ;;  %s716_s16 = sphi %s766_s16, %s906_s16   ;;  %s712_s15 = sphi %s764_s15, %s905_s15  }
   0x5   : > { %s30_s23 = sadd.s32 1, %s728_s19  ;;  %s137_s24 = sadd.s32 1, %s720_s17 }
   0x6   : > { %p32_p0 = scmp.ge.s32.totalorder %s30_s23, 2  ;;  %p147_p1 = scmp.ne.s32.totalorder %s720_s17, %s716_s16 }
   0x7   : > { %p148_p2 = scmp.eq.s32.totalorder %s571_s21, 1  ;;  %p153_p3 = scmp.ne.s32.totalorder %s716_s16, %s712_s15 }
   0x8   : > { %s911_s23 = smov (%p32_p0, %s30_s23), 0  ;;  %p154_p5 = scmp.eq.s32.totalorder %s572_s22, 1 }
   0x9   : > { %p804_p4 = por %p148_p2, %p147_p1  ;;  %s132_s26 = ssub.s32 %s728_s19, %s911_s23 }
   0xa   : > { %p575_p6 = scmp.ge.s32.totalorder %s732_s20, 1  ;;  %p135_p7 = scmp.eq.s32.totalorder %s132_s26, 0 }
   0xb   : > { %p811_p8 = por %p154_p5, %p153_p3  ;;  %p191_p9 = scmp.lt.s32.totalorder %s732_s20, 3 }
   0xc   : > { %s817_s28 = scalar_select %p135_p7, %s720_s17, %s137_s24  }
   0xd   : > { %p192_p10 = pnand %p575_p6, %p191_p9 }
   0xe   : > { %p231_p11 = scmp.lt.s32.totalorder (!%p192_p10), %s724_s18, 1  ;;  %v734_v0 = vmov (!%p192_p10), 0.0   ;;  %v253_v1 = vld [vmem:[%s900_s2] sm:$0xff] (!%p192_p10)  ;;  %v735_v2 = vmov (!%p192_p10), 0   ;;  %v254_v3 = vld [vmem:[%s900_s2 + $0x8] sm:$0xff] (!%p192_p10)  ;;  %vm274_vm0 = vcmask (!%p192_p10), 1043456  }
   0xf   : > { %195 = sbr.rel (%p192_p10) target bundleno = 492 (0x1ec), region = 32  ;;  %343 = vmatprep.mubr.f32.mxu0 (!%p192_p10), %v734_v0  ;;  %652 = vset.pattern.permute.xlu0 (!%p192_p10), %v735_v2  ;;  %v250_v6 = vld [vmem:[%s899_s1] sm:$0xff] (!%p192_p10)  ;;  %vm267_vm1 = vcmask (!%p192_p10), 31744   ;;  %v251_v7 = vld [vmem:[%s899_s1 + $0x8] sm:$0xff] (!%p192_p10)  ;;  %vm374_vm6 = vcmask (!%p192_p10), 7168   ;;  %s227_s30 = sand.u32 (!%p192_p10), 1, %s716_s16  }
  0x10   : > { %257 = vperm.xlu0 (!%p192_p10), %652, %v253_v1   ;;  %vm420_vm7 = vcmask (!%p192_p10), 130048   ;;  %s592_s9 = sshll.u32 (!%p192_p10), %s724_s18, 8  ;;  %s852_s12 = scalar_lea.sflag (!%p192_p10), [#allocation3], %s227_s30 }
  0x14   : > { %262 = vperm.xlu0 (!%p192_p10), %652, %v254_v3  }
  0x16   : > { %s824_s5 = scalar_select %p231_p11, %s724_s18, 1 }
  0x17   : > { %s736_s18 = smov [#allocation2]  }
  0x18   : > { %s590_s6 = sshll.u32 %s824_s5, 3  ;;  %s591_s22 = sshll.u32 %s824_s5, 4 }
  0x19   : > { %s238_s11 = scalar_lea.vmem %s898_s0, %s590_s6  ;;  %s248_s29 = scalar_lea.vmem %s901_s3, %s591_s22 }
  0x1a   : > { %v252_v4 = vld [vmem:[%s238_s11] sm:$0xff]  ;;  %s576_s6 = sshll.u32 %s227_s30, 4  ;;  %s850_s11 = scalar_lea.hbm %s902_s4, %s592_s9 }
  0x1b   : > { %v266_v5 = vcombine.high %v252_v4, %v252_v4  ;;  %s229_s7 = scalar_lea.vmem [#allocation2], %s576_s6  ;;  %s658_s14 = sshll.u32 %s736_s18, 4  ;;  %s659_s14 = int_to_ptr.vmem [resolvable:$false] %s658_s14 }
  0x1c   : > { %s451_s8 = sshll.u32 %s229_s7, 4  ;;  %s660_s21 = scalar_lea.vmem %s659_s14, 512  ;;  %s845_s8 = int_to_ptr.vmem [resolvable:$true] %s451_s8 }
  0x1d   : > { %581 = vmatprep.subr.msk.mxu0 %vm274_vm0, %v266_v5  ;;  %s654_s13 = scalar_lea.vmem %s845_s8, 256  ;;  %p661_p1 = scmp.lt.s32.totalorder %s845_s8, %s659_s14 }
  0x1e   : > { %582 = vmatpush1.msk.msra.mxu0 %vm274_vm0, %v252_v4  ;;  %p655_p12 = scmp.ne.s32.totalorder %s845_s8, %s654_s13  ;;  %p662_p2 = scmp.lt.s32.totalorder %s660_s21, %s654_s13 }
  0x1f   : > { %583 = vmatmul.mubr.msk.f32.vlgmr.msra.gmra.mrb[0].mxu0 %vm267_vm1, %v250_v6 }
  0x20   : > { %349 = vmatprep.mubr.f32.mxu0 %v734_v0  ;;  %p656_p13 = pnand %p655_p12, %p804_p4  ;;  %p663_p3 = por %p662_p2, %p661_p1 }
  0x22   : > { %p657_p0 = pneg %p656_p13 }
  0x23   : > { %584 = vmatmul.mubr.msk.f32.gmra.mrb[2].mxu0 %vm267_vm1, %v251_v7 }
  0x24   : > { %p664_p5 = pnand %p663_p3, %p657_p0 }
  0x8f   : > { %v258_v8 = vpop.permute.xlu0 %257 }
  0x93   : > { %v263_v14 = vpop.permute.xlu0 %262 }
  0xf2   : > { %v345_v9 = vpop.f32.mrb[0].mxu0 }
  0xf3   : > { %v346_v10 = vadd.f32 %v345_v9, %v258_v8  ;;  %v347_v11 = vpop.f32.mrb[1].mxu0 }
  0xf4   : > { %v348_v12 = vadd.f32 %v347_v11, %v258_v8 }
  0xf5   : > { %v360_v13 = vmul.f32 0.2, %v346_v10  ;;  %vm356_vm2 = vcmp.gt.f32.partialorder %v346_v10, 0.0 }
  0xf6   : > { %v361_v15 = vmul.f32 0.2, %v348_v12  ;;  %v351_v16 = vpop.f32.mrb[2].mxu0  ;;  %vm357_vm3 = vcmp.gt.f32.partialorder %v348_v12, 0.0 }
  0xf7   : > { %v352_v17 = vadd.f32 %v351_v16, %v263_v14  ;;  %v353_v18 = vpop.f32.mrb[3].mxu0  ;;  %v364_v19 = vsel %vm356_vm2, %v346_v10, %v360_v13 }
  0xf8   : > { %v354_v20 = vadd.f32 %v353_v18, %v263_v14  ;;  %v365_v21 = vsel %vm357_vm3, %v348_v12, %v361_v15 }
  0xf9   : > { %v362_v22 = vmul.f32 0.2, %v352_v17  ;;  %v368_v23 = vadd.f32 %v365_v21, %v364_v19  ;;  %vm358_vm4 = vcmp.gt.f32.partialorder %v352_v17, 0.0 }
  0xfa   : > { %v363_v24 = vmul.f32 0.2, %v354_v20  ;;  %vm359_vm5 = vcmp.gt.f32.partialorder %v354_v20, 0.0 }
  0xfb   : > { %369 = vadd.xlane.f32.xlu1 %v368_v23  ;;  %v366_v25 = vsel %vm358_vm4, %v352_v17, %v362_v22 }
  0xfc   : > { %v367_v26 = vsel %vm359_vm5, %v354_v20, %v363_v24  ;;  %v377_v27 = vpack.c.bf16 %v366_v25, %v364_v19 }
  0xfd   : > { %v378_v28 = vpack.c.bf16 %v367_v26, %v365_v21  ;;  %v371_v29 = vadd.f32 %v367_v26, %v366_v25 }
  0xff   : > { %379 = vmatprep.subr.bf16.mxu1 %v378_v28  ;;  %411 = vmatprep.mubr.bf16.mxu1 %v378_v28 }
 0x100   : > { %372 = vadd.xlane.f32.xlu1 %v371_v29  ;;  %380 = vmatpush1.bf16.xpose.msra.mxu1 %v377_v27 }
 0x107   : > { %412 = vmatmul.mubr.bf16.vlgmr.msra.gmra.mrb[0].mxu1 %v377_v27 }
 0x188   : > { %v370_v30 = vpop.xlane.xlu1 %369 }
 0x189   : > { %375 = vst.msk [vmem:[%s248_s29] sm:$0xff] %vm374_vm6, %v370_v30 }
 0x18d   : > { %v373_v31 = vpop.xlane.xlu1 %372 }
 0x18e   : > { %376 = vst.msk [vmem:[%s248_s29 + $0x8] sm:$0xff] %vm374_vm6, %v373_v31 }
 0x1da   : > { %v413_v32 = vpop.f32.mrb[0].mxu1 }
 0x1db   : > { %421 = vst.msk [vmem:[%s229_s7] sm:$0xff] %vm420_vm7, %v413_v32  ;;  %v415_v33 = vpop.f32.mrb[1].mxu1 }
 0x1dc   : > { %v416_v34 = vpop.f32.mrb[2].mxu1 }
 0x1dd   : > { %422 = vst.msk [vmem:[%s229_s7 + $0x8] sm:$0xff] %vm420_vm7, %v416_v34  ;;  %v418_v35 = vpop.f32.mrb[3].mxu1 }
 0x1de   : > { %667 = shalt.err (!%p664_p5)
}
 0x1df   : > { %s668_s22 = scalar_lea.hbm %s850_s11, 256  ;;  %s672_s29 = scalar_lea.hbm %s902_s4, 512 }
 0x1e0   : > { %p669_p6 = scmp.ne.s32.totalorder %s850_s11, %s668_s22  ;;  %p673_p10 = scmp.lt.u32.totalorder %s850_s11, %s902_s4 }
 0x1e1   : > { %p674_p11 = scmp.lt.u32.totalorder %s672_s29, %s668_s22  ;;  %p676_p13 = scmp.lt.u32.totalorder %s668_s22, %s850_s11 }
 0x1e2   : > { %p670_p7 = pnand %p669_p6, %p804_p4 }
 0x1e3   : > { %p675_p12 = por %p674_p11, %p673_p10 }
 0x1e4   : > { %p671_p9 = pneg %p670_p7 }
 0x1e5   : > { %p677_p0 = por %p676_p13, %p675_p12 }
 0x1e7   : > { %p678_p1 = pnand %p677_p0, %p671_p9 }
 0x1e9   : > { %681 = shalt.err (!%p678_p1)
}
 0x1ea   : > { %s737_s7 = smov 128   ;;  %s738_s9 = smov 8  }
 0x1eb   : > { %593 = dma.vmem_to_hbm [thread:$0]  (%p804_p4), %s845_s8, 256, %s850_s11, %s852_s12, %s737_s7, %s737_s7, %s738_s9  }
 0x1ec PF: > { %p599_p2 = scmp.ge.s32.totalorder %s732_s20, 2  ;;  %s478_s5 = sand.u32 1, %s712_s15  }
 0x1ed   : > { %s479_s10 = scalar_lea.sflag [#allocation3], %s478_s5 }
 0x1ee   : > { %p596_p3 = pnand %p599_p2, %p811_p8 }
 0x1f0   : > { %707 = dma.done.wait (!%p596_p3), %s479_s10, 256  }
 0x1f1   : > { %709 = vsyncadd (!%p596_p3), %s479_s10, 4294967040  ;;  %s18_s20 = sadd.s32 1, %s732_s20   ;;  %s905_s15 = smov %s716_s16 }
 0x1f2   : > { %p15_p5 = scmp.ge.s32.totalorder %s18_s20, 4   ;;  %s906_s16 = smov %s720_s17 }
 0x1f3   : > { %s907_s17 = smov %s817_s28  ;;  %s908_s18 = smov %s728_s19 }
 0x1f4   : > { %s909_s19 = smov %s911_s23  ;;  %17 = sbr.rel (!%p15_p5) target bundleno = 4 (0x4), region = 79 }
 0x1fb   :  { %484 = vsyncpa [#allocation3], 1 }
 0x1fc   :  { %486 = vsyncpa [#allocation3 + $0x1], 1 }

</bundles_post_ra>
